<compile_context>
chip_gen: v7x
topology: tpu7x:2x2x1
jax: 0.10.0
libtpu: 0.0.40
codegen_flags: <defaults>
</compile_context>

<pallas_src>
import numpy as np
import jax
import jax.numpy as jnp
from jax.experimental import pallas as pl
from jax.experimental.pallas import tpu as pltpu


# ---------------------------------------------------------------------------
# helpers
# ---------------------------------------------------------------------------
def _pick_block(n, max_block, step):
    """Largest multiple of `step` that divides n and is <= max_block.

    If no such divisor exists, returns max_block and the CALLER must pad n up to a
    multiple of the returned tile (never silently returns the whole axis)."""
    if n <= max_block:
        return n
    best = 0
    for cand in range(step, max_block + 1, step):
        if n % cand == 0:
            best = cand
    return best if best > 0 else max_block


def _pad_to_multiple(n, tile):
    return -(-n // tile) * tile


def _vmem_limit_bytes():
    """Generation-aware scoped-VMEM budget (v7x has 64 MiB/TC, v5e/v6e 128 MiB)."""
    try:
        cap = pltpu.get_tpu_info().vmem_capacity_bytes
    except Exception:
        cap = 64 * 1024 * 1024
    return max(32 * 1024 * 1024, min(int(cap * 0.6), 96 * 1024 * 1024))


def bilinear_weights(out_size, in_size, dtype=jnp.float32):
    """Interpolation matrix matching F.interpolate(mode='bilinear', align_corners=False)."""
    scale = in_size / out_size
    dst = np.arange(out_size, dtype=np.float64)
    src = (dst + 0.5) * scale - 0.5
    src = np.clip(src, 0.0, None)                      # PyTorch clamps negative src to 0
    i0 = np.clip(np.floor(src).astype(np.int64), 0, in_size - 1)
    i1 = np.minimum(i0 + 1, in_size - 1)
    w1 = np.clip(src - i0, 0.0, 1.0)
    w0 = 1.0 - w1
    W = np.zeros((out_size, in_size), dtype=np.float64)
    W[np.arange(out_size), i0] += w0
    W[np.arange(out_size), i1] += w1
    return jnp.asarray(W, dtype=dtype)


# ---------------------------------------------------------------------------
# Kernel 1: fused backbone-proxy + head (two channel matmuls + ReLU + biases).
# Lane-dense: pixels in lanes, channels in sublanes. bf16 operands, f32 accumulate.
#   x block: [1, Cin, tp]  w1: [Cf, Cin]  b1: [Cf, 1]  w2: [nc, Cf]  b2: [nc, 1]
#   out block: [1, nc, tp] (bf16 intermediate logits)
# ---------------------------------------------------------------------------
def head_kernel(x_ref, w1_ref, b1_ref, w2_ref, b2_ref, o_ref):
    xb = x_ref[0]                                                       # [Cin, tp] bf16
    h = jnp.dot(w1_ref[...], xb, preferred_element_type=jnp.float32) + b1_ref[...]
    h = jnp.maximum(h, 0.0).astype(jnp.bfloat16)
    o = jnp.dot(w2_ref[...], h, preferred_element_type=jnp.float32) + b2_ref[...]
    o_ref[0] = o.astype(o_ref.dtype)


# ---------------------------------------------------------------------------
# Kernel 2: separable bilinear upsample, single 2-D matmuls per phase.
# Grid (b, class-block, row-block). Column interp once per (b, class-block) at r==0
# into a (Hf, bc*W) VMEM scratch; each row block is one [tr,Hf]@[Hf,bc*W] matmul.
#   f block: [1, bc*Hf, Wf]  wwT: [Wf, W]  wh block: [tr, Hf]  out block: [1, bc, tr, W]
# ---------------------------------------------------------------------------
def upsample_kernel(f_ref, wwT_ref, wh_ref, o_ref, col_ref):
    r = pl.program_id(2)
    bc = o_ref.shape[1]
    Hf = wh_ref.shape[1]
    W = wwT_ref.shape[1]

    # INVARIANT: col_ref is filled at r==0 and reused for r>0, so the row axis MUST stay the
    # innermost, sequentially-iterated ("arbitrary") grid axis. Do not mark it parallel.
    @pl.when(r == 0)
    def _():
        # One MXU matmul for all bc classes: [bc*Hf, Wf] @ [Wf, W].
        col = jnp.dot(f_ref[0], wwT_ref[...], preferred_element_type=jnp.float32)
        for c in range(bc):                      # cheap VMEM copies, once per (b, class-block)
            col_ref[:, c * W:(c + 1) * W] = col[c * Hf:(c + 1) * Hf, :].astype(col_ref.dtype)

    # One MXU matmul for all bc classes: [tr, Hf] @ [Hf, bc*W].
    res = jnp.dot(wh_ref[...], col_ref[...], preferred_element_type=jnp.float32)
    for c in range(bc):                          # static-slice stores, no extra matmuls
        o_ref[0, c] = res[:, c * W:(c + 1) * W].astype(o_ref.dtype)


# ---------------------------------------------------------------------------
# Parameters (PyTorch-like 1x1-conv weight shapes: [Cout, Cin], bias [Cout])
# ---------------------------------------------------------------------------
def init_params(key, c_in=4, c_feat=32, num_classes=3):
    k1, k2, k3, k4 = jax.random.split(key, 4)
    return {
        "w1": jax.random.normal(k1, (c_feat, c_in), jnp.float32) * 0.1,         # backbone proxy
        "b1": jax.random.normal(k2, (c_feat,), jnp.float32) * 0.1,
        "w2": jax.random.normal(k3, (num_classes, c_feat), jnp.float32) * 0.1,  # head proxy
        "b2": jax.random.normal(k4, (num_classes,), jnp.float32) * 0.1,
    }


# ---------------------------------------------------------------------------
# Forward
# ---------------------------------------------------------------------------
def fcntv_forward(x, params, stride=4):
    """x: [B, Cin, H, W] (NCHW). Returns [B, num_classes, H, W] float32."""
    B, Cin, H, W = x.shape
    Cf = params["w1"].shape[0]
    nc = params["w2"].shape[0]
    vmem_limit = _vmem_limit_bytes()

    # --- backbone proxy downsample: stride-s sampling; 1x1 conv handled inside kernel 1 ---
    xs = x[:, :, ::stride, ::stride]                   # [B, Cin, Hf, Wf]
    Hf, Wf = xs.shape[-2], xs.shape[-1]
    P = Hf * Wf
    xs = xs.reshape(B, Cin, P)                         # spatial P in lanes (free view)

    # bf16 operands (f32 accumulation inside the kernels) -> half the DMA bytes, native MXU rate.
    xs = xs.astype(jnp.bfloat16)
    w1 = params["w1"].astype(jnp.bfloat16)             # [Cf, Cin]
    w2 = params["w2"].astype(jnp.bfloat16)             # [nc, Cf]
    b1 = params["b1"].reshape(Cf, 1)                   # f32, added post-accumulation
    b2 = params["b2"].reshape(nc, 1)

    # ---------------- kernel 1: head ----------------
    TP_MAX = 1024                                      # bounded tile: safe on v7x, ~roofline on v6e
    tp = _pick_block(P, TP_MAX, 128)
    P_pad = _pad_to_multiple(P, tp)
    if P_pad != P:
        xs = jnp.pad(xs, ((0, 0), (0, 0), (0, P_pad - P)))
    grid1 = (B, P_pad // tp)

    cost1 = pl.CostEstimate(
        flops=2 * B * P_pad * (Cin * Cf + Cf * nc),
        transcendentals=0,
        bytes_accessed=2 * (B * Cin * P_pad + Cf * Cin + nc * Cf + B * nc * P_pad)
                       + 4 * (Cf + nc),
    )

    logits = pl.pallas_call(
        head_kernel,
        out_shape=jax.ShapeDtypeStruct((B, nc, P_pad), jnp.bfloat16),
        grid=grid1,
        in_specs=[
            pl.BlockSpec((1, Cin, tp), lambda b, p: (b, 0, p)),
            pl.BlockSpec((Cf, Cin), lambda b, p: (0, 0)),
            pl.BlockSpec((Cf, 1), lambda b, p: (0, 0)),
            pl.BlockSpec((nc, Cf), lambda b, p: (0, 0)),
            pl.BlockSpec((nc, 1), lambda b, p: (0, 0)),
        ],
        out_specs=pl.BlockSpec((1, nc, tp), lambda b, p: (b, 0, p)),
        compiler_params=pltpu.CompilerParams(
            dimension_semantics=("parallel", "parallel"),
            vmem_limit_bytes=vmem_limit),
        cost_estimate=cost1,
    )(xs, w1, b1, w2, b2)

    if P_pad != P:
        logits = logits[:, :, :P]
    # free contiguous reshape (no transpose): [B, nc, Hf*Wf] -> [B, nc*Hf, Wf]
    feat = logits.reshape(B, nc * Hf, Wf)

    # ---------------- kernel 2: bilinear upsample ----------------
    wh = bilinear_weights(H, Hf).astype(jnp.bfloat16)        # [H, Hf]   row interpolation
    wwT = bilinear_weights(W, Wf).T.astype(jnp.bfloat16)     # [Wf, W]   column interpolation

    TR_MAX = 256
    tr = _pick_block(H, TR_MAX, 8)
    H_pad = _pad_to_multiple(H, tr)
    if H_pad != H:
        wh = jnp.pad(wh, ((0, H_pad - H), (0, 0)))           # padded rows produce zeros, sliced off
    bc = max(d for d in range(1, min(nc, 8) + 1) if nc % d == 0)   # class tile (divisor of nc)
    grid2 = (B, nc // bc, H_pad // tr)

    cost2 = pl.CostEstimate(
        flops=2 * B * nc * (Hf * Wf * W + H_pad * Hf * W),
        transcendentals=0,
        bytes_accessed=2 * (B * nc * Hf * Wf + Wf * W + H_pad * Hf) + 4 * B * nc * H_pad * W,
    )

    out = pl.pallas_call(
        upsample_kernel,
        out_shape=jax.ShapeDtypeStruct((B, nc, H_pad, W), jnp.float32),
        grid=grid2,
        in_specs=[
            pl.BlockSpec((1, bc * Hf, Wf), lambda b, c, r: (b, c, 0)),
            pl.BlockSpec((Wf, W), lambda b, c, r: (0, 0)),
            pl.BlockSpec((tr, Hf), lambda b, c, r: (r, 0)),
        ],
        out_specs=pl.BlockSpec((1, bc, tr, W), lambda b, c, r: (b, c, r, 0)),
        scratch_shapes=[pltpu.VMEM((Hf, bc * W), jnp.bfloat16)],
        compiler_params=pltpu.CompilerParams(
            # row axis MUST be "arbitrary" (innermost, sequential) for the col scratch reuse.
            dimension_semantics=("parallel", "parallel", "arbitrary"),
            vmem_limit_bytes=vmem_limit),
        cost_estimate=cost2,
    )(feat, wwT, wh)

    if H_pad != H:
        out = out[:, :, :H, :]
    return out


# ---------------------------------------------------------------------------
# Pure-JAX reference with the SAME bf16-operand / f32-accumulate precision
# ---------------------------------------------------------------------------
def fcntv_reference(x, params, stride=4):
    B, Cin, H, W = x.shape
    xs = x[:, :, ::stride, ::stride].astype(jnp.bfloat16)
    Hf, Wf = xs.shape[-2], xs.shape[-1]
    w1 = params["w1"].astype(jnp.bfloat16)
    w2 = params["w2"].astype(jnp.bfloat16)
    h = jnp.einsum("fc,bchw->bfhw", w1, xs, preferred_element_type=jnp.float32)
    h = jnp.maximum(h + params["b1"][None, :, None, None], 0.0).astype(jnp.bfloat16)
    lg = jnp.einsum("nf,bfhw->bnhw", w2, h, preferred_element_type=jnp.float32)
    lg = (lg + params["b2"][None, :, None, None]).astype(jnp.bfloat16)
    wh = bilinear_weights(H, Hf).astype(jnp.bfloat16)
    ww = bilinear_weights(W, Wf).astype(jnp.bfloat16)
    # column interp then row interp (same order/precision as the kernel)
    col = jnp.einsum("bnhw,qw->bnhq", lg, ww,
                     preferred_element_type=jnp.float32).astype(jnp.bfloat16)
    out = jnp.einsum("oh,bnhq->bnoq", wh, col, preferred_element_type=jnp.float32)
    return out


if __name__ == "__main__":
    key = jax.random.PRNGKey(0)
    kx, kp = jax.random.split(key)

    B, Cin, H, W = 2, 4, 16, 16
    x = jax.random.normal(kx, (B, Cin, H, W), jnp.float32)
    params = init_params(kp, c_in=Cin, c_feat=32, num_classes=3)

    y = jax.block_until_ready(fcntv_forward(x, params, stride=4))
    assert y.shape == (B, 3, H, W), y.shape
    assert jnp.all(jnp.isfinite(y))

    y_ref = fcntv_reference(x, params, stride=4)
    err = float(jnp.max(jnp.abs(y - y_ref)))
    assert jnp.allclose(y, y_ref, atol=3e-3, rtol=3e-3), err

    print("KERNEL_OK")
</pallas_src>

<mosaic_0001>
module attributes {stable_mosaic.version = 11 : i64} {
  func.func @head_kernel(%arg0: i32, %arg1: i32, %arg2: memref<1x4x16xbf16, #tpu.memory_space<vmem>>, %arg3: memref<32x4xbf16, #tpu.memory_space<vmem>>, %arg4: memref<32x1xf32, #tpu.memory_space<vmem>>, %arg5: memref<3x32xbf16, #tpu.memory_space<vmem>>, %arg6: memref<3x1xf32, #tpu.memory_space<vmem>>, %arg7: memref<1x3x16xbf16, #tpu.memory_space<vmem>>) attributes {dimension_semantics = [#tpu.dimension_semantics<parallel>, #tpu.dimension_semantics<parallel>], iteration_bounds = array<i64: 2, 1>, scalar_prefetch = 0 : i64, scratch_operands = 0 : i64, tpu.core_type = #tpu.core_type<tc>, window_params = [{transform_indices = @transform_0, window_bounds = array<i64: 1, 4, 16>}, {pipeline_mode = #tpu.pipeline_mode<synchronous>, transform_indices = @transform_1, window_bounds = array<i64: 32, 4>}, {pipeline_mode = #tpu.pipeline_mode<synchronous>, transform_indices = @transform_2, window_bounds = array<i64: 32, 1>}, {pipeline_mode = #tpu.pipeline_mode<synchronous>, transform_indices = @transform_3, window_bounds = array<i64: 3, 32>}, {pipeline_mode = #tpu.pipeline_mode<synchronous>, transform_indices = @transform_4, window_bounds = array<i64: 3, 1>}, {transform_indices = @transform_5, window_bounds = array<i64: 1, 3, 16>}]} {
    %c0 = arith.constant 0 : index
    %c0_0 = arith.constant 0 : index
    %c0_1 = arith.constant 0 : index
    %0 = vector.load %arg2[%c0, %c0_0, %c0_1] : memref<1x4x16xbf16, #tpu.memory_space<vmem>>, vector<1x4x16xbf16>
    %1 = vector.shape_cast %0 : vector<1x4x16xbf16> to vector<4x16xbf16>
    %c0_2 = arith.constant 0 : index
    %c0_3 = arith.constant 0 : index
    %2 = vector.load %arg3[%c0_2, %c0_3] : memref<32x4xbf16, #tpu.memory_space<vmem>>, vector<32x4xbf16>
    %cst = arith.constant dense<0.000000e+00> : vector<32x16xf32>
    %3 = tpu.matmul %2, %1, %cst {dimension_numbers = #tpu.dot_dimension_numbers<[1], [0], [0], [1], [0, 0, 1, 1], [], []>} : vector<32x4xbf16>, vector<4x16xbf16>, vector<32x16xf32> -> vector<32x16xf32>
    %c0_4 = arith.constant 0 : index
    %c0_5 = arith.constant 0 : index
    %4 = vector.load %arg4[%c0_4, %c0_5] : memref<32x1xf32, #tpu.memory_space<vmem>>, vector<32x1xf32>
    %5 = vector.broadcast %4 : vector<32x1xf32> to vector<32x16xf32>
    %6 = arith.addf %3, %5 : vector<32x16xf32>
    %cst_6 = arith.constant 0.000000e+00 : f32
    %7 = vector.broadcast %cst_6 : f32 to vector<32x16xf32>
    %8 = arith.maximumf %6, %7 : vector<32x16xf32>
    %9 = arith.truncf %8 : vector<32x16xf32> to vector<32x16xbf16>
    %c0_7 = arith.constant 0 : index
    %c0_8 = arith.constant 0 : index
    %10 = vector.load %arg5[%c0_7, %c0_8] : memref<3x32xbf16, #tpu.memory_space<vmem>>, vector<3x32xbf16>
    %cst_9 = arith.constant dense<0.000000e+00> : vector<3x16xf32>
    %11 = tpu.matmul %10, %9, %cst_9 {dimension_numbers = #tpu.dot_dimension_numbers<[1], [0], [0], [1], [0, 0, 1, 1], [], []>} : vector<3x32xbf16>, vector<32x16xbf16>, vector<3x16xf32> -> vector<3x16xf32>
    %c0_10 = arith.constant 0 : index
    %c0_11 = arith.constant 0 : index
    %12 = vector.load %arg6[%c0_10, %c0_11] : memref<3x1xf32, #tpu.memory_space<vmem>>, vector<3x1xf32>
    %13 = vector.broadcast %12 : vector<3x1xf32> to vector<3x16xf32>
    %14 = arith.addf %11, %13 : vector<3x16xf32>
    %15 = arith.truncf %14 : vector<3x16xf32> to vector<3x16xbf16>
    %c0_12 = arith.constant 0 : index
    %c0_13 = arith.constant 0 : index
    %c0_14 = arith.constant 0 : index
    %16 = vector.load %arg7[%c0_12, %c0_13, %c0_14] : memref<1x3x16xbf16, #tpu.memory_space<vmem>>, vector<1x3x16xbf16>
    %17 = vector.shape_cast %16 : vector<1x3x16xbf16> to vector<3x16xbf16>
    %18 = vector.shape_cast %15 : vector<3x16xbf16> to vector<1x3x16xbf16>
    tpu.vector_store %arg7[%c0_12, %c0_13, %c0_14], %18 {strides = array<i32>} : memref<1x3x16xbf16, #tpu.memory_space<vmem>>, vector<1x3x16xbf16>,
    return
  }
  func.func @transform_0(%arg0: i32, %arg1: i32) -> (i32, i32, i32) {
    %c0_i32 = arith.constant 0 : i32
    %c0_i32_0 = arith.constant 0 : i32
    return %arg0, %c0_i32, %arg1 : i32, i32, i32
  }
  func.func @transform_1(%arg0: i32, %arg1: i32) -> (i32, i32) {
    %c0_i32 = arith.constant 0 : i32
    %c0_i32_0 = arith.constant 0 : i32
    %c0_i32_1 = arith.constant 0 : i32
    return %c0_i32, %c0_i32_0 : i32, i32
  }
  func.func @transform_2(%arg0: i32, %arg1: i32) -> (i32, i32) {
    %c0_i32 = arith.constant 0 : i32
    %c0_i32_0 = arith.constant 0 : i32
    %c0_i32_1 = arith.constant 0 : i32
    return %c0_i32, %c0_i32_0 : i32, i32
  }
  func.func @transform_3(%arg0: i32, %arg1: i32) -> (i32, i32) {
    %c0_i32 = arith.constant 0 : i32
    %c0_i32_0 = arith.constant 0 : i32
    %c0_i32_1 = arith.constant 0 : i32
    return %c0_i32, %c0_i32_0 : i32, i32
  }
  func.func @transform_4(%arg0: i32, %arg1: i32) -> (i32, i32) {
    %c0_i32 = arith.constant 0 : i32
    %c0_i32_0 = arith.constant 0 : i32
    %c0_i32_1 = arith.constant 0 : i32
    return %c0_i32, %c0_i32_0 : i32, i32
  }
  func.func @transform_5(%arg0: i32, %arg1: i32) -> (i32, i32, i32) {
    %c0_i32 = arith.constant 0 : i32
    %c0_i32_0 = arith.constant 0 : i32
    return %arg0, %c0_i32, %arg1 : i32, i32, i32
  }
}

</mosaic_0001>

<bundles_post_ra>
// kernel: tpu_custom_call.1
= control target key start
LH: loop header
LB: loop body
LE: loop exit
PB: predicated region body
PF: predicated region fallthrough
CT: control target
= control target key end

     0   :  { %s612_s18 = smov 0   ;;  %s614_s19 = smov 0   ;;  %s678_s0 = inlined_call_operand.vmem [shape: bf16[2,4,16], index: 0, kind: input, shape index: {}]   ;;  %s679_s1 = inlined_call_operand.vmem [shape: bf16[32,4], index: 1, kind: input, shape index: {}]   ;;  %s680_s2 = inlined_call_operand.vmem [shape: f32[32,1], index: 2, kind: input, shape index: {}]   ;;  %s681_s3 = inlined_call_operand.vmem [shape: bf16[3,32], index: 3, kind: input, shape index: {}]   ;;  %s682_s4 = inlined_call_operand.vmem [shape: f32[3,1], index: 4, kind: input, shape index: {}]   ;;  %s683_s5 = inlined_call_operand.vmem [shape: bf16[2,3,16], index: 5, kind: output, shape index: {}]  }
   0x1   :  { %s616_s20 = smov 0  }
   0x2 LB: > { %s27_s21 = sadd.s32 1, %s573_s19  ;;  %p493_p0 = scmp.ge.s32.totalorder %s577_s20, 1  ;;  %s577_s20 = sphi %s616_s20, %s15_s20   ;;  %s573_s19 = sphi %s614_s19, %s685_s19   ;;  %s569_s18 = sphi %s612_s18, %s684_s18  }
   0x3   : > { %p29_p1 = scmp.ge.s32.totalorder %s27_s21, 2  ;;  %p205_p2 = scmp.lt.s32.totalorder %s577_s20, 3 }
   0x5   : > { %s687_s21 = smov (%p29_p1, %s27_s21), 0  ;;  %p206_p3 = pnand %p493_p0, %p205_p2 }
   0x6   : > { %p237_p4 = scmp.lt.s32.totalorder (!%p206_p3), %s569_s18, 1  ;;  %v553_v0 = vld [vmem:[%s679_s1] sm:$0xff] (!%p206_p3)   ;;  %vm291_vm0 = vcmask (!%p206_p3), 31744   ;;  %v579_v2 = vmov (!%p206_p3), 0   ;;  %v259_v3 = vld [vmem:[%s680_s2 + $0x10] sm:$0xff] (!%p206_p3)  ;;  %vm298_vm1 = vcmask (!%p206_p3), 1041408  }
   0x7   : > { %209 = sbr.rel (%p206_p3) target bundleno = 468 (0x1d4), region = 40  ;;  %v257_v1 = vld [vmem:[%s680_s2] sm:$0xff] (!%p206_p3)  ;;  %511 = vmatprep.mubr.msk.bf16.mxu0 (!%p206_p3), %vm291_vm0, %v553_v0  ;;  %551 = vset.pattern.permute.xlu0 (!%p206_p3), %v579_v2  ;;  %v258_v4 = vld [vmem:[%s680_s2 + $0x8] sm:$0xff] (!%p206_p3)  ;;  %v260_v6 = vld [vmem:[%s680_s2 + $0x18] sm:$0xff] (!%p206_p3)  ;;  %v580_v10 = vmov (!%p206_p3), 0.0   ;;  %vm581_vm2 = vmmov (!%p206_p3), 0  }
   0x8   : > { %263 = vperm.xlu0 (!%p206_p3), %551, %v257_v1   ;;  %552 = vset.pattern.permute.xlu1 (!%p206_p3), %v579_v2  ;;  %v554_v8 = vld [vmem:[%s679_s1 + $0x8] sm:$0xff] (!%p206_p3)   ;;  %v358_v9 = vld [vmem:[%s682_s4] sm:$0x7] (!%p206_p3)  ;;  %vm364_vm3 = vcmask (!%p206_p3), 261120   ;;  %vm409_vm4 = vcmask (!%p206_p3), 123904  }
   0x9   : > { %273 = vperm.xlu1 (!%p206_p3), %552, %v259_v3   ;;  %515 = vmatprep.subr.bf16.mxu1 (!%p206_p3), %v580_v10  ;;  %v357_v29 = vld [vmem:[%s681_s3] sm:$0x3] (!%p206_p3)  ;;  %vm410_vm5 = vsmask.f32 (!%p206_p3), 1280 }
   0xa   : > { %519 = vmatprep.mubr.msk.bf16.mxu1 (!%p206_p3), %vm581_vm2, %v580_v10  ;;  %vm411_vm6 = vmand (!%p206_p3), %vm409_vm4, %vm410_vm5 }
   0xc   : > { %268 = vperm.xlu0 (!%p206_p3), %551, %v258_v4  }
   0xd   : > { %278 = vperm.xlu1 (!%p206_p3), %552, %v260_v6  }
   0xe   : > { %s689_s18 = smov (!%p237_p4, %s569_s18), 1 }
   0xf   : > { %s494_s28 = sshll.u32 %s689_s18, 1 }
  0x10   : > { %s243_s6 = scalar_lea.vmem %s678_s0, %s494_s28  ;;  %361 = vperm.xlu0 %551, %v358_v9   ;;  %s250_s23 = scalar_lea.vmem %s683_s5, %s494_s28 }
  0x11   : > { %v252_v5 = vld [vmem:[%s243_s6] sm:$0x3] }
  0x12   : > { %523 = vmatprep.subr.msk.bf16.mxu0 %vm298_vm1, %v252_v5  ;;  %v300_v7 = vsel %vm298_vm1, %v252_v5, 0  ;;  %v412_v34 = vld [vmem:[%s250_s23] sm:$0x3] }
  0x13   : > { %510 = vmatpush3.bf16.msra.mxu0 %v300_v7 }
  0x16   : > { %512 = vmatmul.mubr.msk.bf16.vlgmr.msra.gmra.mrb[0].mxu0 %vm291_vm0, %v554_v8 }
  0x87   : > { %v264_v12 = vpop.permute.xlu0 %263 }
  0x88   : > { %v274_v11 = vpop.permute.xlu1 %273 }
  0x8b   : > { %v269_v19 = vpop.permute.xlu0 %268 }
  0x8c   : > { %v279_v14 = vpop.permute.xlu1 %278 }
  0x8f   : > { %v362_v30 = vpop.permute.xlu0 %361 }
  0xe9   : > { %v513_v13 = vpop.f32.mrb[0].mxu0 }
  0xea   : > { %v345_v15 = vadd.f32 %v513_v13, %v274_v11  ;;  %v336_v16 = vpop.f32.mrb[1].mxu0 }
  0xeb   : > { %v337_v17 = vadd.f32 %v336_v16, %v264_v12  ;;  %v514_v18 = vpop.f32.mrb[2].mxu0 }
  0xec   : > { %v348_v20 = vadd.f32 %v514_v18, %v279_v14  ;;  %v339_v21 = vpop.f32.mrb[3].mxu0  ;;  %v353_v23 = vmax.f32 %v345_v15, 0.0 }
  0xed   : > { %v340_v22 = vadd.f32 %v339_v21, %v269_v19  ;;  %v351_v25 = vmax.f32 %v337_v17, 0.0 }
  0xee   : > { %v354_v24 = vmax.f32 %v348_v20, 0.0 }
  0xef   : > { %v352_v26 = vmax.f32 %v340_v22, 0.0 }
  0xf0   : > { %v356_v27 = vpack.c.bf16 %v354_v24, %v353_v23 }
  0xf1   : > { %v355_v28 = vpack.c.bf16 %v352_v26, %v351_v25 }
  0xf3   : > { %516 = vmatpush3.bf16.msra.mxu1 %v355_v28 }
  0xf4   : > { %517 = vmatprep.subr.bf16.mxu1 %v580_v10 }
  0xf7   : > { %518 = vmatpush3.bf16.msra.mxu1 %v356_v27 }
  0xfa   : > { %520 = vmatmul.mubr.msk.bf16.vlgmr.msra.gmra.mrb[0].mxu1 %vm364_vm3, %v357_v29 }
 0x1cd   : > { %v402_v31 = vpop.f32.mrb[0].mxu1 }
 0x1ce   : > { %v403_v32 = vadd.f32 %v402_v31, %v362_v30  ;;  %v521_v33 = vpop.f32.mrb[1].mxu1 }
 0x1cf   : > { %v405_v35 = vpop.f32.mrb[2].mxu1 }
 0x1d0   : > { %v408_v36 = vpack.c.bf16 %v403_v32, %v403_v32  ;;  %v522_v37 = vpop.f32.mrb[3].mxu1 }
 0x1d2   : > { %v413_v38 = vsel %vm411_vm6, %v408_v36, %v412_v34 }
 0x1d3   : > { %414 = vst [vmem:[%s250_s23] sm:$0x3] %v413_v38 }
 0x1d4 PF: > { %s15_s20 = sadd.s32 1, %s577_s20   ;;  %s684_s18 = smov %s573_s19 }
 0x1d5   : > { %p12_p5 = scmp.ge.s32.totalorder %s15_s20, 4   ;;  %s685_s19 = smov %s687_s21 }
 0x1d7   :  { %14 = sbr.rel (!%p12_p5) target bundleno = 2 (0x2), region = 70 }

</bundles_post_ra>
